<compile_context>
chip_gen: v6e
topology: v6e:2x2x1
jax: 0.10.0
libtpu: 0.0.40
codegen_flags: <defaults>
</compile_context>

<pallas_src>
import jax
import jax.numpy as jnp
from jax.experimental import pallas as pl
from jax.experimental.pallas import tpu as pltpu


def _spatial_attn_kernel(x_ref, o_ref):
    """One (Bt, C, HW) slab:  out = x * (mean_c(x) / sum_hw(mean_c(x)) + 1)."""
    x = x_ref[...]                                                  # (Bt, C, HW)
    # Per-batch channel mean and spatial sum; outputs are tiny, keep them f32.
    m = jnp.mean(x.astype(jnp.float32), axis=1, keepdims=True)      # (Bt, 1, HW)
    s = jnp.sum(m, axis=2, keepdims=True)                           # (Bt, 1, 1)
    # Fused residual:  x*z + x == x*(z+1); the +1 happens on the small row.
    z1 = m * pl.reciprocal(s, approx=False) + 1.0                   # (Bt, 1, HW)
    if x.dtype == jnp.float32:
        out = x * z1
    else:
        # bf16-native full-tile multiply (v6e/v7x); only tiny z1 gets cast.
        out = x * z1.astype(x.dtype)
    o_ref[...] = out.astype(o_ref.dtype)


def _plan_block_batch(B, C, HW_pad, itemsize, vmem_tile_budget=8 * 1024 * 1024):
    """How many batch elements to pack into one grid step."""
    # Sublane padding of the (C, HW) slab: 8 rows (f32) / 16 (bf16) / 32 (i8).
    min_sub = 8 * (4 // itemsize)
    c_pad = -(-C // min_sub) * min_sub
    per_batch_bytes = c_pad * HW_pad * itemsize
    # Double-buffered input + output -> 4 tile copies resident at once.
    max_bt = max(1, vmem_tile_budget // (4 * per_batch_bytes))
    divisors = [d for d in range(1, B + 1) if B % d == 0 and d <= max_bt]
    # Prefer keeping >= 2 grid steps so v7x's two TensorCores both get work.
    multi = [d for d in divisors if B // d >= 2]
    bt = max(multi) if multi else max(divisors)
    return bt, per_batch_bytes


def spatial_attn(x):
    """Parameter-free spatial attention.  x: (B, C, H, W) -> (B, C, H, W)."""
    B, C, H, W = x.shape
    HW = H * W
    # Lane-dense spatial axis: pad HW up to a multiple of 128.  Zero padding is
    # exact for this op (padded positions contribute 0 to the channel mean and
    # to the spatial sum) and the zero outputs are sliced off below.
    HW_pad = -(-HW // 128) * 128
    x_flat = x.reshape(B, C, HW)
    if HW_pad != HW:
        x_flat = jnp.pad(x_flat, ((0, 0), (0, 0), (0, HW_pad - HW)))

    itemsize = jnp.dtype(x.dtype).itemsize
    bt, per_batch_bytes = _plan_block_batch(B, C, HW_pad, itemsize)
    grid = (B // bt,)

    # TODO(synk): if a single per-batch (C, HW) slab ever exceeds the VMEM
    # budget (very large C*H*W on v7x's 64 MiB part), switch to a two-phase
    # HW-tiled reduce-then-apply scheme instead of this one-pass whole-slab block.
    tile_bytes = bt * per_batch_bytes
    vmem_limit = int(min(96 * 1024 * 1024,
                         max(32 * 1024 * 1024, 6 * tile_bytes)))

    out_flat = pl.pallas_call(
        _spatial_attn_kernel,
        out_shape=jax.ShapeDtypeStruct((B, C, HW_pad), x.dtype),
        grid_spec=pltpu.PrefetchScalarGridSpec(
            num_scalar_prefetch=0,
            grid=grid,
            in_specs=[pl.BlockSpec((bt, C, HW_pad), lambda b: (b, 0, 0))],
            out_specs=pl.BlockSpec((bt, C, HW_pad), lambda b: (b, 0, 0)),
        ),
        compiler_params=pltpu.CompilerParams(
            dimension_semantics=("parallel",),
            vmem_limit_bytes=vmem_limit,
        ),
    )(x_flat)

    if HW_pad != HW:
        out_flat = out_flat[:, :, :HW]
    return out_flat.reshape(B, C, H, W)


def spatial_attn_ref(x):
    """Pure-JAX reference matching the PyTorch forward."""
    m = jnp.mean(x, axis=1, keepdims=True)                       # (B, 1, H, W)
    s = jnp.sum(m.reshape(x.shape[0], -1), axis=-1)              # (B,)
    z = m / s[:, None, None, None]
    return x * z + x


if __name__ == "__main__":
    key = jax.random.PRNGKey(0)
    B, C, H, W = 2, 4, 16, 16
    x = jax.random.normal(key, (B, C, H, W), dtype=jnp.float32)

    out = spatial_attn(x)
    jax.block_until_ready(out)
    ref = spatial_attn_ref(x)
    assert out.shape == (B, C, H, W)
    assert jnp.allclose(out, ref, atol=1e-5, rtol=1e-5), "f32 mismatch vs reference"

    # Ragged spatial extent exercises the pad-to-128 path (HW = 196 -> 256).
    x2 = jax.random.normal(jax.random.PRNGKey(1), (2, 4, 14, 14), dtype=jnp.float32)
    out2 = spatial_attn(x2)
    jax.block_until_ready(out2)
    assert jnp.allclose(out2, spatial_attn_ref(x2), atol=1e-4, rtol=1e-4), \
        "padded-HW mismatch vs reference"

    # bf16-native path (big tile stays bf16; reductions accumulate in f32).
    xb = x.astype(jnp.bfloat16)
    outb = spatial_attn(xb)
    jax.block_until_ready(outb)
    refb = spatial_attn_ref(xb.astype(jnp.float32))
    assert jnp.allclose(outb.astype(jnp.float32), refb, atol=2e-2, rtol=2e-2), \
        "bf16 mismatch vs reference"

    print("KERNEL_OK")
</pallas_src>

<mosaic_0001>
module attributes {stable_mosaic.version = 11 : i64} {
  func.func @_spatial_attn_kernel(%arg0: i32, %arg1: memref<1x4x256xf32, #tpu.memory_space<vmem>>, %arg2: memref<1x4x256xf32, #tpu.memory_space<vmem>>) attributes {dimension_semantics = [#tpu.dimension_semantics<parallel>], iteration_bounds = array<i64: 2>, scalar_prefetch = 0 : i64, scratch_operands = 0 : i64, tpu.core_type = #tpu.core_type<tc>, window_params = [{transform_indices = @transform_0, window_bounds = array<i64: 1, 4, 256>}, {transform_indices = @transform_1, window_bounds = array<i64: 1, 4, 256>}]} {
    %c0 = arith.constant 0 : index
    %c0_0 = arith.constant 0 : index
    %c0_1 = arith.constant 0 : index
    %0 = vector.load %arg1[%c0, %c0_0, %c0_1] : memref<1x4x256xf32, #tpu.memory_space<vmem>>, vector<1x4x256xf32>
    %cst = arith.constant dense<0.000000e+00> : vector<1x256xf32>
    %1 = vector.multi_reduction <add>, %0, %cst [1] : vector<1x4x256xf32> to vector<1x256xf32>
    %2 = vector.shape_cast %1 : vector<1x256xf32> to vector<1x1x256xf32>
    %cst_2 = arith.constant 4.000000e+00 : f32
    %3 = vector.broadcast %cst_2 : f32 to vector<1x1x256xf32>
    %4 = arith.divf %2, %3 : vector<1x1x256xf32>
    %cst_3 = arith.constant dense<0.000000e+00> : vector<1x1xf32>
    %5 = vector.multi_reduction <add>, %4, %cst_3 [2] : vector<1x1x256xf32> to vector<1x1xf32>
    %6 = vector.shape_cast %5 : vector<1x1xf32> to vector<1x1x1xf32>
    %7 = tpu.reciprocal %6 : vector<1x1x1xf32> -> vector<1x1x1xf32>
    %8 = vector.broadcast %7 : vector<1x1x1xf32> to vector<1x1x256xf32>
    %9 = arith.mulf %4, %8 : vector<1x1x256xf32>
    %cst_4 = arith.constant 1.000000e+00 : f32
    %10 = vector.broadcast %cst_4 : f32 to vector<1x1x256xf32>
    %11 = arith.addf %9, %10 : vector<1x1x256xf32>
    %12 = vector.broadcast %11 : vector<1x1x256xf32> to vector<1x4x256xf32>
    %13 = arith.mulf %0, %12 : vector<1x4x256xf32>
    %c0_5 = arith.constant 0 : index
    %c0_6 = arith.constant 0 : index
    %c0_7 = arith.constant 0 : index
    %14 = vector.load %arg2[%c0_5, %c0_6, %c0_7] : memref<1x4x256xf32, #tpu.memory_space<vmem>>, vector<1x4x256xf32>
    tpu.vector_store %arg2[%c0_5, %c0_6, %c0_7], %13 {strides = array<i32>} : memref<1x4x256xf32, #tpu.memory_space<vmem>>, vector<1x4x256xf32>,
    return
  }
  func.func @transform_0(%arg0: i32) -> (i32, i32, i32) {
    %c0_i32 = arith.constant 0 : i32
    %c0_i32_0 = arith.constant 0 : i32
    %c0_i32_1 = arith.constant 0 : i32
    return %arg0, %c0_i32, %c0_i32_0 : i32, i32, i32
  }
  func.func @transform_1(%arg0: i32) -> (i32, i32, i32) {
    %c0_i32 = arith.constant 0 : i32
    %c0_i32_0 = arith.constant 0 : i32
    %c0_i32_1 = arith.constant 0 : i32
    return %arg0, %c0_i32, %c0_i32_0 : i32, i32, i32
  }
}

</mosaic_0001>

<bundles_post_ra>
// kernel: tpu_custom_call.1
= control target key start
LH: loop header
LB: loop body
LE: loop exit
PB: predicated region body
PF: predicated region fallthrough
CT: control target
= control target key end

     0   :  { %6 = vsyncpa [#allocation3], 0  ;;  %s570_s0 = inlined_call_operand.hbm [shape: f32[2,4,256], index: 0, kind: input, shape index: {}]   ;;  %s571_s1 = inlined_call_operand.hbm [shape: f32[2,4,256], index: 1, kind: output, shape index: {}]  }
   0x1   :  { %8 = vsyncpa [#allocation3 + $0x1], 0 }
   0x2   :  { %9 = vsyncpa [#allocation4], 0 }
   0x3   :  { %11 = vsyncpa [#allocation4 + $0x1], 0  ;;  %s425_s6 = smov 0   ;;  %s427_s7 = smov 0  }
   0x4   :  { %s429_s8 = smov 0   ;;  %s431_s9 = smov 0  }
   0x5 LB: > { %s446_s10 = sadd.s32 4294967295, %s411_s9   ;;  %s254_s11 = sadd.s32 4294967294, %s411_s9   ;;  %s411_s9 = sphi %s431_s9, %s588_s9   ;;  %s407_s8 = sphi %s429_s8, %s587_s8   ;;  %s403_s7 = sphi %s427_s7, %s586_s7   ;;  %s399_s6 = sphi %s425_s6, %s585_s6  }
   0x6   : > { %s450_s12 = sadd.s32 1, %s411_s9   ;;  %s24_s13 = sadd.s32 1, %s407_s8 }
   0x7   : > { %s21_s14 = ssub.s32 %s411_s9, %s450_s12  ;;  %p31_p0 = scmp.ne.s32.totalorder %s407_s8, %s403_s7 }
   0x8   : > { %p22_p1 = scmp.eq.s32.totalorder %s21_s14, 0  ;;  %p32_p2 = scmp.eq.s32.totalorder %s411_s9, 0 }
   0x9   : > { %p37_p3 = scmp.ne.s32.totalorder %s403_s7, %s399_s6  ;;  %p38_p4 = scmp.eq.s32.totalorder %s446_s10, 0 }
   0xa   : > { %s462_s15 = scalar_select %p22_p1, %s407_s8, %s24_s13  }
   0xb   : > { %p464_p5 = por %p32_p2, %p31_p0  ;;  %p468_p6 = por %p38_p4, %p37_p3 }
   0xc   : > { %p61_p7 = scmp.eq.s32.totalorder %s446_s10, 1  ;;  %p67_p8 = scmp.eq.s32.totalorder %s254_s11, 1 }
   0xd   : > { %s575_s17 = scalar_select %p468_p6, 1, 0 }
   0xe   : > { %p282_p10 = scmp.lt.s32.totalorder %s411_s9, 2  ;;  %p475_p11 = por %p61_p7, %p31_p0 }
   0xf   : > { %p479_p12 = por %p67_p8, %p37_p3  ;;  %s87_s20 = sand.u32 1, %s407_s8  }
  0x10   : > { %s576_s18 = scalar_select %p475_p11, 1, 0 }
  0x11   : > { %s577_s19 = scalar_select %p479_p12, 1, 0 }
  0x12   : > { %s268_s21 = sshll.u32 %s411_s9, 7  ;;  %s257_s22 = sshll.u32 %s87_s20, 3 }
  0x13   : > { %s488_s25 = scalar_lea.hbm %s570_s0, %s268_s21  ;;  %s91_s26 = scalar_lea.vmem [#allocation2], %s257_s22 }
  0x14   : > { %s99_s27 = sshll.u32 %s91_s26, 4  ;;  %p492_p13 = pnand %p282_p10, %p464_p5  ;;  %s496_s27 = int_to_ptr.vmem [resolvable:$true] %s99_s27 }
  0x15   : > { %s88_s29 = scalar_lea.sflag [#allocation3], %s87_s20  ;;  %s319_s30 = scalar_lea.hbm %s488_s25, 128 }
  0x16   : > { %p320_p2 = scmp.ne.s32.totalorder %s488_s25, %s319_s30  ;;  %p321_p3 = pneg %p492_p13 }
  0x17   : > { %s324_s4 = scalar_lea.hbm %s570_s0, 256  ;;  %p325_p5 = scmp.lt.s32.totalorder %s488_s25, %s570_s0 }
  0x18   : > { %p322_p4 = pnand %p321_p3, %p320_p2  ;;  %p326_p8 = scmp.lt.s32.totalorder %s324_s4, %s319_s30 }
  0x1a   : > { %p323_p7 = pneg %p322_p4  ;;  %p327_p10 = por %p326_p8, %p325_p5 }
  0x1c   : > { %p328_p9 = pnand %p327_p10, %p323_p7 }
  0x1e   : > { %331 = shalt.err (!%p328_p9)
}
  0x1f   : > { %s332_s13 = scalar_lea.vmem %s496_s27, 128  ;;  %s413_s14 = smov [#allocation2]  }
  0x20   : > { %p333_p0 = scmp.ne.s32.totalorder %s496_s27, %s332_s13  ;;  %s337_s16 = sshll.u32 %s413_s14, 4  ;;  %s338_s16 = int_to_ptr.vmem [resolvable:$false] %s337_s16 }
  0x21   : > { %s339_s20 = scalar_lea.vmem %s338_s16, 256  ;;  %p340_p4 = scmp.lt.s32.totalorder %s496_s27, %s338_s16 }
  0x22   : > { %p335_p1 = pnand %p333_p0, %p321_p3  ;;  %p341_p12 = scmp.lt.s32.totalorder %s339_s20, %s332_s13 }
  0x24   : > { %p336_p2 = pneg %p335_p1  ;;  %p342_p11 = por %p341_p12, %p340_p4 }
  0x26   : > { %p343_p6 = pnand %p342_p11, %p336_p2 }
  0x28   : > { %346 = shalt.err (!%p343_p6)
}
  0x29   : > { %277 = dma.hbm_to_vmem [thread:$0]  (!%p492_p13), %s488_s25, 128, %s496_s27, %s88_s29  }
  0x2a   : > { %p579_p9 = scmp.lt.s32.totalorder %s411_s9, 3  ;;  %p580_p7 = scmp.ge.s32.totalorder %s411_s9, 1 }
  0x2c   : > { %p105_p0 = pnand %p580_p7, %p579_p9 }
  0x2d   : > { %s523_s21 = sand.u32 (!%p105_p0), 1, %s403_s7   ;;  %p581_p6 = scmp.ne.s32.totalorder (!%p105_p0), %s575_s17, 0 }
  0x2e   : > { %108 = sbr.rel (%p105_p0) target bundleno = 245 (0xf5), region = 24  ;;  %s261_s22 = sshll.u32 (!%p105_p0), %s523_s21, 3 }
  0x2f   : > { %s111_s23 = scalar_lea.sflag (!%p105_p0), [#allocation3], %s523_s21  ;;  %s114_s24 = scalar_lea.vmem (!%p105_p0), [#allocation2], %s261_s22 }
  0x33   : > { %390 = dma.done.wait (%p581_p6), %s111_s23, 128  }
  0x34   : > { %392 = vsyncadd (%p581_p6), %s111_s23, 4294967168  ;;  %vm137_vm0 = vcmask 1043456   ;;  %v133_v0 = vld [vmem:[%s114_s24] sm:$0xff]  ;;  %s269_s17 = sshll.u32 %s446_s10, 7  ;;  %s132_s25 = scalar_lea.vmem [#allocation5], %s261_s22 }
  0x35   : > { %v135_v1 = vcombine.high %v133_v0, %v133_v0  ;;  %v138_v2 = vsel %vm137_vm0, %v133_v0, 0.0  ;;  %s184_s26 = sshll.u32 %s132_s25, 4  ;;  %s182_s29 = scalar_lea.hbm %s571_s1, %s269_s17  ;;  %s185_s26 = int_to_ptr.vmem [resolvable:$true] %s184_s26 }
  0x36   : > { %v139_v3 = vrot.slane %v138_v2, 4  ;;  %s170_s30 = scalar_lea.sflag [#allocation4], %s523_s21  ;;  %s347_s2 = scalar_lea.vmem %s185_s26, 128 }
  0x37   : > { %v145_v4 = vsel %vm137_vm0, %v135_v1, 0.0  ;;  %p348_p11 = scmp.ne.s32.totalorder %s185_s26, %s347_s2  ;;  %p582_p12 = scmp.ne.s32.totalorder %s576_s18, 0 }
  0x38   : > { %v140_v5 = vadd.f32 %v139_v3, %v138_v2  ;;  %v146_v6 = vrot.slane %v145_v4, 4  ;;  %s414_s3 = smov [#allocation5]  }
  0x39   : > { %p349_p13 = pnand %p348_p11, %p582_p12  ;;  %s351_s4 = sshll.u32 %s414_s3, 4  ;;  %s352_s4 = int_to_ptr.vmem [resolvable:$false] %s351_s4 }
  0x3a   : > { %v141_v7 = vrot.slane %v140_v5, 2  ;;  %v147_v8 = vadd.f32 %v146_v6, %v145_v4  ;;  %s353_s10 = scalar_lea.vmem %s352_s4, 256  ;;  %p354_p3 = scmp.lt.s32.totalorder %s185_s26, %s352_s4 }
  0x3b   : > { %p350_p1 = pneg %p349_p13  ;;  %p355_p5 = scmp.lt.s32.totalorder %s353_s10, %s347_s2 }
  0x3c   : > { %v142_v9 = vadd.f32 %v141_v7, %v140_v5  ;;  %v148_v10 = vrot.slane %v147_v8, 2 }
  0x3d   : > { %p356_p8 = por %p355_p5, %p354_p3 }
  0x3e   : > { %v143_v11 = vrot.slane %v142_v9, 1  ;;  %v149_v12 = vadd.f32 %v148_v10, %v147_v8 }
  0x3f   : > { %p357_p10 = pnand %p356_p8, %p350_p1 }
  0x40   : > { %v144_v13 = vadd.f32 %v143_v11, %v142_v9  ;;  %v150_v14 = vrot.slane %v149_v12, 1 }
  0x42   : > { %v151_v15 = vadd.f32 %v150_v14, %v149_v12  ;;  %v153_v16 = vmul.f32 0.25, %v144_v13 }
  0x44   : > { %v154_v17 = vmul.f32 0.25, %v151_v15 }
  0x46   : > { %v155_v18 = vadd.f32 %v154_v17, %v153_v16 }
  0x48   : > { %156 = vadd.xlane.f32.xlu0 %v155_v18 }
  0xd1   : > { %v157_v19 = vpop.xlane.xlu0 %156 }
  0xd2   : > { %317 = vrcp.f32 %v157_v19 }
  0xdf   : > { %v318_v20 = vpop.eup %317 }
  0xe0   : > { %v159_v21 = vmul.f32 %v318_v20, %v153_v16  ;;  %v160_v22 = vmul.f32 %v318_v20, %v154_v17 }
  0xe2   : > { %v161_v23 = vadd.f32 1.0, %v159_v21  ;;  %v162_v24 = vadd.f32 1.0, %v160_v22 }
  0xe4   : > { %v165_v25 = vcombine.low %v161_v23, %v162_v24 }
  0xe6   : > { %v167_v26 = vmul.f32 %v165_v25, %v133_v0 }
  0xe8   : > { %168 = vst [vmem:[%s132_s25] sm:$0xff] %v167_v26 }
  0xe9   : > { %360 = shalt.err (!%p357_p10)
}
  0xea   : > { %s361_s5 = scalar_lea.hbm %s182_s29, 128  ;;  %s365_s14 = scalar_lea.hbm %s571_s1, 256 }
  0xeb   : > { %p362_p2 = scmp.ne.s32.totalorder %s182_s29, %s361_s5  ;;  %p366_p7 = scmp.lt.s32.totalorder %s182_s29, %s571_s1 }
  0xec   : > { %p367_p0 = scmp.lt.s32.totalorder %s365_s14, %s361_s5 }
  0xed   : > { %p363_p4 = pnand %p362_p2, %p582_p12 }
  0xee   : > { %p368_p6 = por %p367_p0, %p366_p7 }
  0xef   : > { %p364_p9 = pneg %p363_p4 }
  0xf1   : > { %p369_p11 = pnand %p368_p6, %p364_p9 }
  0xf3   : > { %372 = shalt.err (!%p369_p11)
}
  0xf4   : > { %272 = dma.vmem_to_hbm [thread:$0]  (%p582_p12), %s185_s26, 128, %s182_s29, %s170_s30  }
  0xf5 PF: > { %s196_s21 = sand.u32 1, %s399_s6   ;;  %p583_p13 = scmp.ne.s32.totalorder %s577_s19, 0 }
  0xf6   : > { %p584_p1 = scmp.ge.s32.totalorder %s411_s9, 2  ;;  %s197_s22 = scalar_lea.sflag [#allocation4], %s196_s21 }
  0xf8   : > { %p279_p3 = pnand %p584_p1, %p583_p13 }
  0xfa   : > { %p280_p5 = pneg %p279_p3 }
  0xfc   : > { %394 = dma.done.wait (%p280_p5), %s197_s22, 128  }
  0xfd   : > { %396 = vsyncadd (%p280_p5), %s197_s22, 4294967168  ;;  %p14_p8 = scmp.ge.s32.totalorder %s450_s12, 4   ;;  %s585_s6 = smov %s403_s7 }
  0xfe   : > { %s586_s7 = smov %s407_s8  ;;  %s587_s8 = smov %s462_s15 }
  0xff   : > { %s588_s9 = smov %s450_s12  ;;  %16 = sbr.rel (!%p14_p8) target bundleno = 5 (0x5), region = 69 }
 0x104   :  { %202 = vsyncpa [#allocation3], 1 }
 0x105   :  { %204 = vsyncpa [#allocation3 + $0x1], 1 }
 0x106   :  { %205 = vsyncpa [#allocation4], 1 }
 0x107   :  { %207 = vsyncpa [#allocation4 + $0x1], 1 }

</bundles_post_ra>
